<compile_context>
chip_gen: v7x
topology: tpu7x:2x2x1
jax: 0.10.0
libtpu: 0.0.40
codegen_flags: <defaults>
</compile_context>

<pallas_src>
import functools
import math

import jax
import jax.numpy as jnp
from jax import lax
from jax.experimental import pallas as pl
from jax.experimental.pallas import tpu as pltpu


def _round_up(x: int, m: int) -> int:
    return ((x + m - 1) // m) * m


# ---------------------------------------------------------------------------
# Path 1: one-hot gather on the MXU, vocab tiled along the grid.
# ---------------------------------------------------------------------------
def _embed_onehot_kernel(ids_ref, emb_ref, out_ref, acc_ref, *, scale, vb, num_vb):
    v = pl.program_id(1)

    @pl.when(v == 0)
    def _():
        acc_ref[...] = jnp.zeros_like(acc_ref)

    ids = ids_ref[...]                                              # (TB, 1) int32
    tb = ids.shape[0]
    # Global vocab index of each lane in this vocab tile.
    iota = lax.broadcasted_iota(jnp.int32, (tb, vb), 1) + v * vb    # (TB, VB)
    # Plain 0/1 one-hot in the table dtype (scale applied to the f32 accumulator
    # at finalize — avoids quantizing sqrt(D) to bf16 for low-precision tables).
    sel = (iota == ids).astype(emb_ref.dtype)                       # (TB, VB)
    acc_ref[...] += jnp.dot(sel, emb_ref[...],
                            preferred_element_type=jnp.float32)

    @pl.when(v == num_vb - 1)
    def _():
        out_ref[...] = (acc_ref[...] * scale).astype(out_ref.dtype)


# ---------------------------------------------------------------------------
# Path 2: scalar-prefetched ids (SMEM) + manual double-buffered DMA row gather.
# ---------------------------------------------------------------------------
def _embed_dma_kernel(ids_smem, emb_hbm, out_ref, row_buf, sems, *,
                      scale, tb, total_tokens):
    blk = pl.program_id(0)
    nblk = pl.num_programs(0)

    def issue_gather(block_idx, slot):
        base = block_idx * tb

        def _one(t, carry):
            # Clamp: the partial last block re-fetches a valid token; the extra
            # rows fall out of bounds of the output block and are dropped on
            # write-back, so they never reach the result.
            pos = jnp.minimum(base + t, total_tokens - 1)
            row = ids_smem[pos]
            pltpu.make_async_copy(
                emb_hbm.at[pl.ds(row, 1), :],
                row_buf.at[slot, pl.ds(t, 1), :],
                sems.at[slot],
            ).start()
            return carry

        # Partially unrolled so descriptor builds pipeline on the scalar path
        # (this loop, not HBM bandwidth, was the bottleneck).
        lax.fori_loop(0, tb, _one, 0, unroll=8)

    # Prime the pipeline with the first block.
    @pl.when(blk == 0)
    def _():
        issue_gather(0, 0)

    # Prefetch the NEXT block's rows into the other slot before waiting on the
    # current one: hides gather latency under this step's wait/scale/writeback.
    @pl.when(blk + 1 < nblk)
    def _():
        issue_gather(blk + 1, (blk + 1) % 2)

    slot = blk % 2
    # All `tb` row copies for this slot signal the same DMA semaphore; a single
    # wait sized to the whole (tb, D) slot (identical total byte count) accounts
    # for all of them — no per-row wait loop.
    pltpu.make_async_copy(
        emb_hbm.at[pl.ds(0, tb), :],
        row_buf.at[slot],
        sems.at[slot],
    ).wait()

    rows = row_buf[slot].astype(jnp.float32)
    out_ref[...] = (rows * scale).astype(out_ref.dtype)


# ---------------------------------------------------------------------------
# Wrapper
# ---------------------------------------------------------------------------
def input_embeddings_pallas(x, emb_table, *, token_block=256,
                            onehot_table_bytes=None,
                            vmem_budget_bytes=20 * 1024 * 1024):
    """x: int token ids (B, S); emb_table: (vocab_size, dimensions)."""
    B, S = x.shape
    V, D = emb_table.shape
    T = B * S
    scale = float(math.sqrt(D))
    out_dtype = emb_table.dtype
    itemsize = emb_table.dtype.itemsize
    table_bytes = V * D * itemsize
    row_bytes = D * itemsize

    if onehot_table_bytes is None:
        # The table is streamed (not resident), so the one-hot threshold can be
        # generous; bump it further when rows are so small (< 512 B) that
        # per-row DMAs would be hopelessly descriptor-bound on every generation.
        onehot_table_bytes = (16 * 1024 * 1024 if row_bytes < 512
                              else 8 * 1024 * 1024)

    # Base token block: big enough to fill the MXU / amortize per-step overhead,
    # clamped to the (8-rounded) token count.
    tb_base = _round_up(min(token_block, _round_up(T, 8)), 8)

    if table_bytes <= onehot_table_bytes:
        # ---- one-hot MXU path (table streamed through VMEM in VB chunks) ----
        # Keep acc (f32) + double-buffered output within the VMEM budget.
        per_tok = D * (4 + 2 * out_dtype.itemsize)
        tb_cap = max(8, (vmem_budget_bytes // per_tok) // 8 * 8)
        TB = min(tb_base, tb_cap)
        num_tb = pl.cdiv(T, TB)

        # Vocab tile: multiple of 128 (lane-dense contraction), bounded so a
        # double-buffered (VB, D) table block stays small.
        vb_cap = max(128, ((2 * 1024 * 1024) // max(row_bytes, 1)) // 128 * 128)
        VB = min(512, vb_cap, _round_up(V, 128))
        Vp = _round_up(V, VB)
        num_vb = Vp // VB

        table = emb_table
        if Vp != V:
            # Padded rows are all-zero and never selected (ids < V), so they do
            # not change the result.
            table = jnp.pad(emb_table, ((0, Vp - V), (0, 0)))
        ids = x.reshape(T, 1).astype(jnp.int32)
        # NOTE: the partial last token block may read stale ids past the end of
        # the ids array; those rows only feed the one-hot compare and their
        # output rows fall out of bounds and are dropped, so this is safe.

        kernel = functools.partial(_embed_onehot_kernel,
                                   scale=scale, vb=VB, num_vb=num_vb)
        out = pl.pallas_call(
            kernel,
            out_shape=jax.ShapeDtypeStruct((T, D), out_dtype),
            grid_spec=pltpu.PrefetchScalarGridSpec(
                num_scalar_prefetch=0,
                grid=(num_tb, num_vb),                      # reduction axis last
                in_specs=[
                    pl.BlockSpec((TB, 1), lambda i, v: (i, 0)),   # token ids
                    pl.BlockSpec((VB, D), lambda i, v: (v, 0)),   # table chunk
                ],
                out_specs=pl.BlockSpec((TB, D), lambda i, v: (i, 0)),
                scratch_shapes=[pltpu.VMEM((TB, D), jnp.float32)],
            ),
            compiler_params=pltpu.CompilerParams(
                dimension_semantics=("parallel", "arbitrary"),
                vmem_limit_bytes=32 * 1024 * 1024),
        )(ids, table)
        return out.reshape(B, S, D)

    # ---- DMA row-gather path (large vocab; table stays in HBM) ----
    # VMEM: 2-slot row_buf + double-buffered output block; derive TB from that.
    per_tok = D * (2 * itemsize + 2 * out_dtype.itemsize)
    tb_cap = max(8, (vmem_budget_bytes // per_tok) // 8 * 8)
    TB = min(tb_base, tb_cap)
    num_blocks = pl.cdiv(T, TB)

    ids = x.reshape(T).astype(jnp.int32)
    kernel = functools.partial(_embed_dma_kernel,
                               scale=scale, tb=TB, total_tokens=T)
    out = pl.pallas_call(
        kernel,
        out_shape=jax.ShapeDtypeStruct((T, D), out_dtype),
        grid_spec=pltpu.PrefetchScalarGridSpec(
            num_scalar_prefetch=1,                           # ids -> SMEM
            grid=(num_blocks,),
            in_specs=[pl.BlockSpec(memory_space=pl.ANY)],    # table stays in HBM
            out_specs=pl.BlockSpec((TB, D), lambda i, ids_ref: (i, 0)),
            scratch_shapes=[
                pltpu.VMEM((2, TB, D), emb_table.dtype),     # double-buffered rows
                pltpu.SemaphoreType.DMA((2,)),               # per-slot DMA sems
            ],
        ),
        # "arbitrary": the cross-step double-buffer carry requires sequential
        # grid order on a core.
        compiler_params=pltpu.CompilerParams(
            dimension_semantics=("arbitrary",),
            vmem_limit_bytes=32 * 1024 * 1024),
    )(ids, emb_table)
    return out.reshape(B, S, D)


if __name__ == "__main__":
    key = jax.random.PRNGKey(0)
    k1, k2, k3, k4 = jax.random.split(key, 4)

    # Case 1: module-default-ish small shapes -> one-hot path, single vocab tile.
    dimensions, vocab_size, B, S = 128, 64, 2, 8
    x1 = jax.random.randint(k1, (B, S), 0, vocab_size, dtype=jnp.int32)
    emb1 = jax.random.normal(k2, (vocab_size, dimensions), dtype=jnp.float32)

    out1 = jax.block_until_ready(input_embeddings_pallas(x1, emb1))
    ref1 = jnp.take(emb1, x1, axis=0) * math.sqrt(dimensions)
    assert out1.shape == (B, S, dimensions)
    assert out1.dtype == emb1.dtype
    assert jnp.allclose(out1, ref1, atol=1e-4, rtol=1e-5), "one-hot path mismatch"

    # Case 2: mid-size vocab, default dispatch -> one-hot path with vocab tiling
    # (tiny 512 B rows would be terrible for per-row DMAs).
    vocab_mid, B2, S2 = 8192, 4, 128
    x2 = jax.random.randint(k3, (B2, S2), 0, vocab_mid, dtype=jnp.int32)
    emb2 = jax.random.normal(k4, (vocab_mid, dimensions), dtype=jnp.float32)

    out2 = jax.block_until_ready(input_embeddings_pallas(x2, emb2))
    ref2 = jnp.take(emb2, x2, axis=0) * math.sqrt(dimensions)
    assert out2.shape == (B2, S2, dimensions)
    assert jnp.allclose(out2, ref2, atol=1e-4, rtol=1e-5), "onehot-tiled mismatch"

    # Case 3: same data, forced onto the HBM row-gather path (exercises the
    # unrolled DMA issue, aggregate wait and cross-step double buffering over
    # two token blocks).
    out3 = jax.block_until_ready(
        input_embeddings_pallas(x2, emb2, onehot_table_bytes=0))
    assert out3.shape == (B2, S2, dimensions)
    assert jnp.allclose(out3, ref2, atol=1e-4, rtol=1e-5), "dma path mismatch"

    print("KERNEL_OK")
</pallas_src>

<mosaic_0001>
module attributes {stable_mosaic.version = 11 : i64} {
  func.func @_embed_onehot_kernel(%arg0: i32, %arg1: i32, %arg2: memref<16x1xi32, #tpu.memory_space<vmem>>, %arg3: memref<128x128xf32, #tpu.memory_space<vmem>>, %arg4: memref<16x128xf32, #tpu.memory_space<vmem>>, %arg5: memref<16x128xf32, #tpu.memory_space<vmem>>) attributes {dimension_semantics = [#tpu.dimension_semantics<parallel>, #tpu.dimension_semantics<arbitrary>], iteration_bounds = array<i64: 1, 1>, scalar_prefetch = 0 : i64, scratch_operands = 1 : i64, tpu.core_type = #tpu.core_type<tc>, window_params = [{transform_indices = @transform_0, window_bounds = array<i64: 16, 1>}, {transform_indices = @transform_1, window_bounds = array<i64: 128, 128>}, {transform_indices = @transform_2, window_bounds = array<i64: 16, 128>}]} {
    %c0_i32 = arith.constant 0 : i32
    %0 = arith.cmpi eq, %arg1, %c0_i32 : i32
    %1 = arith.extui %0 : i1 to i32
    %c0_i32_0 = arith.constant 0 : i32
    %2 = arith.cmpi ne, %1, %c0_i32_0 : i32
    scf.if %2 {
      %cst_10 = arith.constant 0.000000e+00 : f32
      %20 = vector.broadcast %cst_10 : f32 to vector<16x128xf32>
      %c0_11 = arith.constant 0 : index
      %c0_12 = arith.constant 0 : index
      %21 = vector.load %arg5[%c0_11, %c0_12] : memref<16x128xf32, #tpu.memory_space<vmem>>, vector<16x128xf32>
      tpu.vector_store %arg5[%c0_11, %c0_12], %20 {strides = array<i32>} : memref<16x128xf32, #tpu.memory_space<vmem>>, vector<16x128xf32>,
    } else {
    }
    %c0 = arith.constant 0 : index
    %c0_1 = arith.constant 0 : index
    %3 = vector.load %arg2[%c0, %c0_1] : memref<16x1xi32, #tpu.memory_space<vmem>>, vector<16x1xi32>
    %4 = tpu.iota {dimensions = array<i32: 1>} : vector<16x128xi32>
    %c128_i32 = arith.constant 128 : i32
    %5 = arith.muli %arg1, %c128_i32 : i32
    %6 = vector.broadcast %5 : i32 to vector<16x128xi32>
    %7 = arith.addi %4, %6 : vector<16x128xi32>
    %8 = vector.broadcast %3 : vector<16x1xi32> to vector<16x128xi32>
    %9 = arith.cmpi eq, %7, %8 : vector<16x128xi32>
    %10 = arith.extui %9 : vector<16x128xi1> to vector<16x128xi32>
    %11 = arith.sitofp %10 : vector<16x128xi32> to vector<16x128xf32>
    %c0_2 = arith.constant 0 : index
    %c0_3 = arith.constant 0 : index
    %12 = vector.load %arg5[%c0_2, %c0_3] : memref<16x128xf32, #tpu.memory_space<vmem>>, vector<16x128xf32>
    %c0_4 = arith.constant 0 : index
    %c0_5 = arith.constant 0 : index
    %13 = vector.load %arg3[%c0_4, %c0_5] : memref<128x128xf32, #tpu.memory_space<vmem>>, vector<128x128xf32>
    %cst = arith.constant dense<0.000000e+00> : vector<16x128xf32>
    %14 = tpu.matmul %11, %13, %cst {dimension_numbers = #tpu.dot_dimension_numbers<[1], [0], [0], [1], [0, 0, 1, 1], [], []>} : vector<16x128xf32>, vector<128x128xf32>, vector<16x128xf32> -> vector<16x128xf32>
    %15 = arith.addf %12, %14 : vector<16x128xf32>
    %c0_6 = arith.constant 0 : index
    %c0_7 = arith.constant 0 : index
    %16 = vector.load %arg5[%c0_6, %c0_7] : memref<16x128xf32, #tpu.memory_space<vmem>>, vector<16x128xf32>
    tpu.vector_store %arg5[%c0_6, %c0_7], %15 {strides = array<i32>} : memref<16x128xf32, #tpu.memory_space<vmem>>, vector<16x128xf32>,
    %c0_i32_8 = arith.constant 0 : i32
    %17 = arith.cmpi eq, %arg1, %c0_i32_8 : i32
    %18 = arith.extui %17 : i1 to i32
    %c0_i32_9 = arith.constant 0 : i32
    %19 = arith.cmpi ne, %18, %c0_i32_9 : i32
    scf.if %19 {
      %c0_10 = arith.constant 0 : index
      %c0_11 = arith.constant 0 : index
      %20 = vector.load %arg5[%c0_10, %c0_11] : memref<16x128xf32, #tpu.memory_space<vmem>>, vector<16x128xf32>
      %cst_12 = arith.constant 11.3137083 : f32
      %21 = vector.broadcast %cst_12 : f32 to vector<16x128xf32>
      %22 = arith.mulf %20, %21 : vector<16x128xf32>
      %c0_13 = arith.constant 0 : index
      %c0_14 = arith.constant 0 : index
      %23 = vector.load %arg4[%c0_13, %c0_14] : memref<16x128xf32, #tpu.memory_space<vmem>>, vector<16x128xf32>
      tpu.vector_store %arg4[%c0_13, %c0_14], %22 {strides = array<i32>} : memref<16x128xf32, #tpu.memory_space<vmem>>, vector<16x128xf32>,
    } else {
    }
    return
  }
  func.func @transform_0(%arg0: i32, %arg1: i32) -> (i32, i32) {
    %c0_i32 = arith.constant 0 : i32
    %c0_i32_0 = arith.constant 0 : i32
    return %arg0, %c0_i32 : i32, i32
  }
  func.func @transform_1(%arg0: i32, %arg1: i32) -> (i32, i32) {
    %c0_i32 = arith.constant 0 : i32
    %c0_i32_0 = arith.constant 0 : i32
    return %arg1, %c0_i32 : i32, i32
  }
  func.func @transform_2(%arg0: i32, %arg1: i32) -> (i32, i32) {
    %c0_i32 = arith.constant 0 : i32
    %c0_i32_0 = arith.constant 0 : i32
    return %arg0, %c0_i32 : i32, i32
  }
}

</mosaic_0001>

<bundles_post_ra>
// kernel: tpu_custom_call.1
= control target key start
LH: loop header
LB: loop body
LE: loop exit
PB: predicated region body
PF: predicated region fallthrough
CT: control target
= control target key end

     0   :  { %7 = vsyncpa [#allocation4], 0  ;;  %s375_s0 = inlined_call_operand.vmem [shape: s32[16,1], index: 0, kind: input, shape index: {}]   ;;  %s376_s1 = inlined_call_operand.hbm [shape: f32[128,128], index: 1, kind: input, shape index: {}]   ;;  %s377_s2 = inlined_call_operand.hbm [shape: f32[16,128], index: 2, kind: output, shape index: {}]  }
   0x1   :  { %8 = vsyncpa [#allocation5], 0  ;;  %s318_s9 = smov [#allocation3]   ;;  %s270_s13 = scalar_lea.hbm %s376_s1, 2048 }
   0x2   :  { %s16_s10 = sshll.u32 %s318_s9, 4  ;;  %p271_p0 = scmp.ne.s32.totalorder %s376_s1, %s270_s13  ;;  %s17_s10 = int_to_ptr.vmem [resolvable:$true] %s16_s10 }
   0x3   :  { %p274_p1 = scmp.lt.u32.totalorder %s270_s13, %s376_s1 }
   0x5   :  { %p276_p2 = pnand %p274_p1, %p271_p0 }
   0x7   :  { %279 = shalt.err (!%p276_p2)
}
   0x8   :  { %s280_s18 = scalar_lea.vmem %s17_s10, 2048  ;;  %p285_p4 = scmp.lt.s32.totalorder %s17_s10, %s17_s10 }
   0x9   :  { %p281_p3 = scmp.ne.s32.totalorder %s17_s10, %s280_s18  ;;  %p286_p5 = scmp.lt.s32.totalorder %s280_s18, %s280_s18 }
   0xb   :  { %p287_p6 = por %p286_p5, %p285_p4 }
   0xd   :  { %p288_p7 = pnand %p287_p6, %p281_p3 }
   0xf   :  { %291 = shalt.err (!%p288_p7)
}
  0x10   :  { %s319_s19 = smov 128   ;;  %s320_s20 = smov 8  }
  0x11   :  { %22 = dma.hbm_to_vmem [thread:$0]  %s376_s1, 2048, %s17_s10, [#allocation4], %s319_s19, %s319_s19, %s320_s20  }
  0x12   :  { %314 = dma.done.wait [#allocation4], 2048  }
  0x13   :  { %315 = vsyncadd [#allocation4], 4294965248  ;;  %v321_v0 = vmov 0   ;;  %v32_v1 = vld [vmem:[%s375_s0] sm:$0xff]  ;;  %v54_v3 = vld [vmem:[#allocation3 + $0x8] sm:$0xff]  ;;  %v34_v27 = vlaneseq  ;;  %v322_v30 = vmov 1.0  }
  0x14   :  { %269 = vset.pattern.permute.xlu0 %v321_v0  ;;  %v53_v2 = vld [vmem:[#allocation3] sm:$0xff]  ;;  %v55_v4 = vld [vmem:[#allocation3 + $0x10] sm:$0xff]  ;;  %v56_v5 = vld [vmem:[#allocation3 + $0x18] sm:$0xff] }
  0x15   :  { %40 = vperm.xlu0 %269, %v32_v1   ;;  %v33_v6 = vld [vmem:[%s375_s0 + $0x8] sm:$0xff]  ;;  %v231_v7 = vpack.c.bf16 %v54_v3, %v53_v2  ;;  %v235_v8 = vpack.c.bf16 %v56_v5, %v55_v4  ;;  %v57_v9 = vld [vmem:[#allocation3 + $0x20] sm:$0xff]  ;;  %v59_v12 = vld [vmem:[#allocation3 + $0x30] sm:$0xff]  ;;  %v35_v28 = vand.u32 127, %v34_v27  ;;  %s323_s0 = smov [#allocation6]  }
  0x16   :  { %v58_v10 = vld [vmem:[#allocation3 + $0x28] sm:$0xff]  ;;  %v60_v13 = vld [vmem:[#allocation3 + $0x38] sm:$0xff]  ;;  %v61_v15 = vld [vmem:[#allocation3 + $0x40] sm:$0xff]  ;;  %s162_s1 = sshll.u32 %s323_s0, 4  ;;  %s163_s1 = int_to_ptr.vmem [resolvable:$true] %s162_s1 }
  0x17   :  { %232 = vmatprep.subr.bf16.mxu0 %v231_v7  ;;  %v239_v11 = vpack.c.bf16 %v58_v10, %v57_v9  ;;  %v243_v14 = vpack.c.bf16 %v60_v13, %v59_v12  ;;  %v62_v16 = vld [vmem:[#allocation3 + $0x48] sm:$0xff]  ;;  %v63_v18 = vld [vmem:[#allocation3 + $0x50] sm:$0xff]  ;;  %v64_v19 = vld [vmem:[#allocation3 + $0x58] sm:$0xff]  ;;  %s292_s27 = scalar_lea.vmem %s163_s1, 256  ;;  %p297_p9 = scmp.lt.s32.totalorder %s163_s1, %s163_s1 }
  0x18   :  { %234 = vmatpush3.bf16.msra.mxu0 %v231_v7  ;;  %v247_v17 = vpack.c.bf16 %v62_v16, %v61_v15  ;;  %v251_v20 = vpack.c.bf16 %v64_v19, %v63_v18  ;;  %v65_v21 = vld [vmem:[#allocation3 + $0x60] sm:$0xff]  ;;  %v66_v22 = vld [vmem:[#allocation3 + $0x68] sm:$0xff]  ;;  %v67_v24 = vld [vmem:[#allocation3 + $0x70] sm:$0xff]  ;;  %p293_p8 = scmp.ne.s32.totalorder %s163_s1, %s292_s27  ;;  %p298_p10 = scmp.lt.s32.totalorder %s292_s27, %s292_s27 }
  0x19   :  { %43 = vperm.xlu0 %269, %v33_v6   ;;  %236 = vmatprep.subr.bf16.mxu0 %v235_v8  ;;  %v255_v23 = vpack.c.bf16 %v66_v22, %v65_v21  ;;  %v68_v25 = vld [vmem:[#allocation3 + $0x78] sm:$0xff] }
  0x1a   :  { %v259_v26 = vpack.c.bf16 %v68_v25, %v67_v24  ;;  %p299_p11 = por %p298_p10, %p297_p9 }
  0x1c   :  { %238 = vmatpush3.bf16.msra.mxu0 %v235_v8  ;;  %p300_p12 = pnand %p299_p11, %p293_p8 }
  0x1d   :  { %240 = vmatprep.subr.bf16.mxu0 %v239_v11 }
  0x20   :  { %242 = vmatpush3.bf16.msra.mxu0 %v239_v11 }
  0x21   :  { %244 = vmatprep.subr.bf16.mxu0 %v243_v14 }
  0x24   :  { %246 = vmatpush3.bf16.msra.mxu0 %v243_v14 }
  0x25   :  { %248 = vmatprep.subr.bf16.mxu0 %v247_v17 }
  0x28   :  { %250 = vmatpush3.bf16.msra.mxu0 %v247_v17 }
  0x29   :  { %252 = vmatprep.subr.bf16.mxu0 %v251_v20 }
  0x2c   :  { %254 = vmatpush3.bf16.msra.mxu0 %v251_v20 }
  0x2d   :  { %256 = vmatprep.subr.bf16.mxu0 %v255_v23 }
  0x30   :  { %258 = vmatpush3.bf16.msra.mxu0 %v255_v23 }
  0x31   :  { %260 = vmatprep.subr.bf16.mxu0 %v259_v26 }
  0x34   :  { %262 = vmatpush3.bf16.msra.mxu0 %v259_v26 }
  0x94   :  { %v41_v29 = vpop.permute.xlu0 %40 }
  0x95   :  { %vm45_vm0 = vcmp.eq.s32.totalorder %v35_v28, %v41_v29 }
  0x96   :  { %228 = vmatprep.mubr.msk.f32.mxu0 %vm45_vm0, %v322_v30 }
  0x98   :  { %v44_v31 = vpop.permute.xlu0 %43 }
  0x99   :  { %vm46_vm1 = vcmp.eq.s32.totalorder %v35_v28, %v44_v31 }
  0x9a   :  { %229 = vmatmul.mubr.msk.f32.vlgmr.msra.gmra.mrb[0].mxu0 %vm46_vm1, %v322_v30 }
 0x16d   :  { %v230_v32 = vpop.f32.mrb[0].mxu0 }
 0x16e   :  { %v154_v33 = vmul.f32 11.313708, %v230_v32  ;;  %v135_v34 = vpop.f32.mrb[1].mxu0 }
 0x16f   :  { %v153_v35 = vmul.f32 11.313708, %v135_v34 }
 0x170   :  { %156 = vst [vmem:[#allocation6 + $0x8] sm:$0xff] %v154_v33 }
 0x171   :  { %155 = vst [vmem:[#allocation6] sm:$0xff] %v153_v35 }
 0x172   :  { %303 = shalt.err (!%p300_p12)
}
 0x173   :  { %s304_s30 = scalar_lea.hbm %s377_s2, 256 }
 0x174   :  { %p305_p13 = scmp.ne.s32.totalorder %s377_s2, %s304_s30  ;;  %p308_p0 = scmp.lt.u32.totalorder %s304_s30, %s377_s2 }
 0x176   :  { %p310_p1 = pnand %p308_p0, %p305_p13 }
 0x178   :  { %313 = shalt.err (!%p310_p1)
}
 0x179   :  { %168 = dma.vmem_to_hbm [thread:$0]  %s163_s1, 256, %s377_s2, [#allocation5], %s319_s19, %s319_s19, %s320_s20  }
 0x17a   :  { %316 = dma.done.wait [#allocation5], 256  }
 0x17b   :  { %317 = vsyncadd [#allocation5], 4294967040 }
 0x17c   :  { %172 = vsyncpa [#allocation4], 1 }
 0x17d   :  { %173 = vsyncpa [#allocation5], 1 }

</bundles_post_ra>
